<compile_context>
chip_gen: v7x
topology: tpu7x:2x2x1
jax: 0.10.0
libtpu: 0.0.40
codegen_flags: <defaults>
</compile_context>

<pallas_src>
import functools
import math

import jax
import jax.numpy as jnp
from jax.experimental import pallas as pl
from jax.experimental.pallas import tpu as pltpu


# Size tiles assuming v7x: 64 MiB physical / 32 MiB scoped VMEM (also fine on v5e/v6e).
_VMEM_LIMIT = 32 * 1024 * 1024


def _fit_tile(dim, target, align):
    """Largest tile <= target that is a multiple of `align` and divides `dim`,
    or the full dim when the dim is small / has no aligned divisor (always legal)."""
    if dim <= target:
        return dim
    t = (target // align) * align
    while t >= align:
        if dim % t == 0:
            return t
        t -= align
    return dim


# ----------------------------- tiled linear (MXU) -----------------------------

def _linear_kernel(x_ref, w_ref, b_ref, o_ref, acc_ref):
    @pl.when(pl.program_id(2) == 0)
    def _init():
        acc_ref[...] = jnp.zeros_like(acc_ref)

    acc_ref[...] += jnp.dot(x_ref[...], w_ref[...],
                            preferred_element_type=jnp.float32)

    @pl.when(pl.program_id(2) == pl.num_programs(2) - 1)
    def _fin():
        o_ref[...] = (acc_ref[...] + b_ref[...]).astype(o_ref.dtype)


def linear_pallas(x2d, w, b, *, tm=256, tn=512, tk=512):
    """x2d: (M, K), w: (K, N), b: (N,) -> (M, N)  (nn.Linear with weight stored (in,out))."""
    M, K = x2d.shape
    N = w.shape[1]
    tm = _fit_tile(M, tm, 8)
    tn = _fit_tile(N, tn, 128)
    tk = _fit_tile(K, tk, 128)
    b2 = b.reshape(1, N)
    return pl.pallas_call(
        _linear_kernel,
        out_shape=jax.ShapeDtypeStruct((M, N), x2d.dtype),
        grid=(M // tm, N // tn, K // tk),
        in_specs=[pl.BlockSpec((tm, tk), lambda i, j, k: (i, k)),
                  pl.BlockSpec((tk, tn), lambda i, j, k: (k, j)),
                  pl.BlockSpec((1, tn), lambda i, j, k: (0, j))],
        out_specs=pl.BlockSpec((tm, tn), lambda i, j, k: (i, j)),
        scratch_shapes=[pltpu.VMEM((tm, tn), jnp.float32)],
        compiler_params=pltpu.CompilerParams(
            dimension_semantics=("parallel", "parallel", "arbitrary"),
            vmem_limit_bytes=_VMEM_LIMIT),
    )(x2d, w, b2)


# ------------------- parallel retention (rotary + decay mask fused) -------------------

def _rope(x, cos, sin):
    """Interleaved rotary: out = x*cos + rot(x)*sin with rot[2i]=-x[2i+1], rot[2i+1]=x[2i]."""
    n = x.shape[-1]
    even = (jax.lax.broadcasted_iota(jnp.int32, x.shape, 1) % 2) == 0
    x_next = pltpu.roll(x, n - 1, axis=1)    # x[(j+1) % n]  (within-pair, never wraps a pair)
    x_prev = pltpu.roll(x, 1, axis=1)        # x[(j-1) % n]
    x_rot = jnp.where(even, -x_next, x_prev)
    return x * cos + x_rot * sin


def _retention_kernel(q_ref, k_ref, v_ref, cos_ref, sin_ref, o_ref,
                      *, gammas, heads, key_dim, value_dim, k_scale, seq_len, tq):
    # q: (tq, H*dk) query tile; k: (T, H*dk); v: (T, H*dv); cos/sin: (T, H*dk)  -- lane-dense.
    q0 = pl.multiple_of(pl.program_id(1) * tq, tq)

    q = _rope(q_ref[...].astype(jnp.float32),
              cos_ref[pl.ds(q0, tq), :], sin_ref[pl.ds(q0, tq), :])
    k = _rope(k_ref[...].astype(jnp.float32) * k_scale, cos_ref[...], sin_ref[...])
    v = v_ref[...].astype(jnp.float32)

    # decay mask built in-kernel from iota (no (H,T,T) HBM stream)
    ri = (jax.lax.broadcasted_iota(jnp.int32, (tq, seq_len), 0) + q0).astype(jnp.float32)
    cj = jax.lax.broadcasted_iota(jnp.int32, (tq, seq_len), 1).astype(jnp.float32)
    diff = ri - cj
    causal = diff >= 0.0
    dpos = jnp.maximum(diff, 0.0)            # keep exp() argument bounded

    outs = []
    for h in range(heads):                   # static loop over heads (2-D MXU dots)
        qh = q[:, h * key_dim:(h + 1) * key_dim]
        kh = k[:, h * key_dim:(h + 1) * key_dim]
        vh = v[:, h * value_dim:(h + 1) * value_dim]

        dec = jnp.where(causal, jnp.exp(gammas[h] * dpos), 0.0)             # (tq, T)
        inv_scale = jax.lax.rsqrt(jnp.sum(dec, axis=-1, keepdims=True))     # 1/sqrt(row sum)

        qk = jax.lax.dot_general(qh, kh, (((1,), (1,)), ((), ())),
                                 preferred_element_type=jnp.float32)        # (tq, T)
        qkm = qk * (dec * inv_scale)
        denom = jnp.clip(jnp.sum(jnp.abs(qkm), axis=-1, keepdims=True), 1.0, 5.0e4)
        qkm = qkm * pl.reciprocal(denom, approx=True)
        outs.append(jnp.dot(qkm, vh, preferred_element_type=jnp.float32))   # (tq, dv)

    o_ref[...] = jnp.concatenate(outs, axis=-1).astype(o_ref.dtype)         # (tq, H*dv)


def retention_pallas(q, k, v, cos, sin, *, gammas, heads, key_dim, value_dim,
                     k_scale, tq=256):
    """q,k: (B,T,H*dk), v: (B,T,H*dv), cos/sin: (T,H*dk) -> (B,T,H*dv)."""
    B, T, C = q.shape
    Dv = v.shape[-1]
    tq = _fit_tile(T, tq, 8)
    kernel = functools.partial(
        _retention_kernel, gammas=gammas, heads=heads, key_dim=key_dim,
        value_dim=value_dim, k_scale=k_scale, seq_len=T, tq=tq)
    return pl.pallas_call(
        kernel,
        out_shape=jax.ShapeDtypeStruct((B, T, Dv), q.dtype),
        grid=(B, T // tq),
        in_specs=[pl.BlockSpec((None, tq, C), lambda b, i: (b, i, 0)),   # q tile
                  pl.BlockSpec((None, T, C), lambda b, i: (b, 0, 0)),    # full k (reused over i)
                  pl.BlockSpec((None, T, Dv), lambda b, i: (b, 0, 0)),   # full v
                  pl.BlockSpec((T, C), lambda b, i: (0, 0)),             # cos (full T, sliced in-kernel)
                  pl.BlockSpec((T, C), lambda b, i: (0, 0))],            # sin
        out_specs=pl.BlockSpec((None, tq, Dv), lambda b, i: (b, i, 0)),
        compiler_params=pltpu.CompilerParams(
            dimension_semantics=("parallel", "arbitrary"),
            vmem_limit_bytes=_VMEM_LIMIT),
    )(q, k, v, cos, sin)


# ---------------- per-head RMSNorm ("groupnorm") fused with SiLU gate ----------------

def _groupnorm_gate_kernel(r_ref, g_ref, w_ref, o_ref, *, heads, value_dim):
    r = r_ref[...].astype(jnp.float32)       # (tr, H*dv), heads contiguous along lanes
    g = g_ref[...].astype(jnp.float32)
    chunks = []
    for h in range(heads):                   # static loop, static lane slices
        xs = r[:, h * value_dim:(h + 1) * value_dim]
        ms = jnp.mean(xs * xs, axis=-1, keepdims=True)
        chunks.append(xs * jax.lax.rsqrt(ms + 1e-6))
    y = jnp.concatenate(chunks, axis=-1) * w_ref[...]
    gate = g / (1.0 + jnp.exp(-g))           # SiLU(g), fused epilogue
    o_ref[...] = (gate * y).astype(o_ref.dtype)


def groupnorm_gate_pallas(r2d, g2d, w, *, heads, value_dim, tr=512):
    """r2d, g2d: (M, H*dv), w: (dv,) -> silu(g) * RMSNorm_per_head(r) * w, shape (M, H*dv)."""
    M, D = r2d.shape
    tr = _fit_tile(M, tr, 8)
    w_full = jnp.tile(w, heads).reshape(1, D)
    kernel = functools.partial(_groupnorm_gate_kernel, heads=heads, value_dim=value_dim)
    return pl.pallas_call(
        kernel,
        out_shape=jax.ShapeDtypeStruct((M, D), r2d.dtype),
        grid=(M // tr,),
        in_specs=[pl.BlockSpec((tr, D), lambda i: (i, 0)),
                  pl.BlockSpec((tr, D), lambda i: (i, 0)),
                  pl.BlockSpec((1, D), lambda i: (0, 0))],
        out_specs=pl.BlockSpec((tr, D), lambda i: (i, 0)),
        compiler_params=pltpu.CompilerParams(
            dimension_semantics=("parallel",), vmem_limit_bytes=_VMEM_LIMIT),
    )(r2d, g2d, w_full)


# ------------------------------ plain-JAX glue ------------------------------

def rope_tables(T, key_dim, heads):
    """Interleaved rotary cos/sin tables tiled across heads -> (T, heads*key_dim).
    (static-shape constant computation; constant-folded under jit)"""
    inv_freq = 1.0 / (10000.0 ** (jnp.arange(0, key_dim, 2, dtype=jnp.float32) / key_dim))
    t = jnp.arange(T, dtype=jnp.float32)
    freqs = t[:, None] * inv_freq[None, :]            # (T, dk/2)
    freqs = jnp.repeat(freqs, 2, axis=-1)             # (T, dk)  [f0,f0,f1,f1,...]
    freqs = jnp.tile(freqs, (1, heads))               # (T, H*dk) same table per head
    return jnp.cos(freqs), jnp.sin(freqs)


def retnet_gammas(heads):
    """gamma = log(1 - 2^(-5-h)); deterministic from config -> baked into the kernel."""
    return tuple(float(math.log(1.0 - 2.0 ** (-5.0 - h))) for h in range(heads))


# --------------------------- Retention module forward ---------------------------

def retention_forward(p, x, *, heads, key_dim, value_dim):
    """Parallel-retention path of Retention.forward (training mode, dropout p=0)."""
    B, T, C = x.shape
    Dv = heads * value_dim
    x2 = x.reshape(B * T, C)

    # one fused projection: columns are [q | k | v | g]
    y = linear_pallas(x2, p["in_w"], p["in_b"])                    # (BT, 2C + 2Dv)
    q = y[:, :C].reshape(B, T, C)
    k = y[:, C:2 * C].reshape(B, T, C)
    v = y[:, 2 * C:2 * C + Dv].reshape(B, T, Dv)
    g = y[:, 2 * C + Dv:]                                          # (BT, Dv) gate

    cos, sin = rope_tables(T, key_dim, heads)
    gammas = retnet_gammas(heads)

    # rotary + k-scaling + causal decay mask + normalized retention fused in one kernel;
    # output already in (B, T, H*dv) lane-dense layout (no transposes around the kernel).
    r = retention_pallas(q, k, v, cos, sin, gammas=gammas, heads=heads,
                         key_dim=key_dim, value_dim=value_dim, k_scale=C ** -0.5)

    nl = groupnorm_gate_pallas(r.reshape(B * T, Dv), g, p["gn_w"],
                               heads=heads, value_dim=value_dim)
    out = linear_pallas(nl, p["lo_w"], p["lo_b"])                  # (BT, C)
    return out.reshape(B, T, C)                                    # dropout p=0 -> identity
    # TODO(synk): ChunkWiseRetention / RecurerentRetention (inference / T > block_size)
    # paths are not implemented; only the parallel-retention training path is covered.


# ------------------------------ parameter init ------------------------------

def _xavier(key, shape, gain=1.0):
    fan_in, fan_out = shape
    a = gain * (6.0 / (fan_in + fan_out)) ** 0.5
    return jax.random.uniform(key, shape, jnp.float32, -a, a)


def init_retention_params(key, *, n_embd, n_heads, valuebd):
    value_dim = valuebd // n_heads
    k_qk, k_v, k_g, k_lo = jax.random.split(key, 4)
    qk_w = _xavier(k_qk, (n_embd, 2 * n_embd), gain=2 ** -2.5)
    v_w = _xavier(k_v, (n_embd, valuebd), gain=2 ** -2.5)
    g_w = _xavier(k_g, (n_embd, valuebd), gain=2 ** -2.5)
    return {
        # fused input projection [q | k | v | g]
        "in_w": jnp.concatenate([qk_w, v_w, g_w], axis=1),
        "in_b": jnp.zeros((2 * n_embd + 2 * valuebd,), jnp.float32),
        "lo_w": _xavier(k_lo, (valuebd, n_embd), gain=2 ** -1),
        "lo_b": jnp.zeros((n_embd,), jnp.float32),
        "gn_w": jnp.ones((value_dim,), jnp.float32),   # RMSNorm(value_dim) weight
    }


# ----------------------------------- main -----------------------------------

if __name__ == "__main__":
    # small config consistent with the module
    n_embd = 32
    n_heads = 2
    valuebd = 64
    block_size = 16
    B, T = 2, 8          # T <= block_size -> parallel retention path

    key_dim = n_embd // n_heads
    value_dim = valuebd // n_heads

    root = jax.random.PRNGKey(0)
    k_params, k_x = jax.random.split(root)
    params = init_retention_params(k_params, n_embd=n_embd, n_heads=n_heads,
                                   valuebd=valuebd)
    x = jax.random.normal(k_x, (B, T, n_embd), jnp.float32)

    fwd = jax.jit(functools.partial(retention_forward, heads=n_heads,
                                    key_dim=key_dim, value_dim=value_dim))
    out = fwd(params, x)
    out = jax.block_until_ready(out)

    assert out.shape == (B, T, n_embd), out.shape
    assert bool(jnp.all(jnp.isfinite(out)))
    print("KERNEL_OK")
</pallas_src>

<mosaic_0001>
module attributes {stable_mosaic.version = 11 : i64} {
  func.func @_linear_kernel(%arg0: i32, %arg1: i32, %arg2: i32, %arg3: memref<16x32xf32, #tpu.memory_space<vmem>>, %arg4: memref<32x192xf32, #tpu.memory_space<vmem>>, %arg5: memref<1x192xf32, #tpu.memory_space<vmem>>, %arg6: memref<16x192xf32, #tpu.memory_space<vmem>>, %arg7: memref<16x192xf32, #tpu.memory_space<vmem>>) attributes {dimension_semantics = [#tpu.dimension_semantics<parallel>, #tpu.dimension_semantics<parallel>, #tpu.dimension_semantics<arbitrary>], iteration_bounds = array<i64: 1, 1, 1>, scalar_prefetch = 0 : i64, scratch_operands = 1 : i64, tpu.core_type = #tpu.core_type<tc>, window_params = [{transform_indices = @transform_0, window_bounds = array<i64: 16, 32>}, {transform_indices = @transform_1, window_bounds = array<i64: 32, 192>}, {transform_indices = @transform_2, window_bounds = array<i64: 1, 192>}, {transform_indices = @transform_3, window_bounds = array<i64: 16, 192>}]} {
    %c0_i32 = arith.constant 0 : i32
    %0 = arith.cmpi eq, %arg2, %c0_i32 : i32
    %1 = arith.extui %0 : i1 to i32
    %c0_i32_0 = arith.constant 0 : i32
    %2 = arith.cmpi ne, %1, %c0_i32_0 : i32
    scf.if %2 {
      %cst_10 = arith.constant 0.000000e+00 : f32
      %12 = vector.broadcast %cst_10 : f32 to vector<16x192xf32>
      %c0_11 = arith.constant 0 : index
      %c0_12 = arith.constant 0 : index
      %13 = vector.load %arg7[%c0_11, %c0_12] : memref<16x192xf32, #tpu.memory_space<vmem>>, vector<16x192xf32>
      tpu.vector_store %arg7[%c0_11, %c0_12], %12 {strides = array<i32>} : memref<16x192xf32, #tpu.memory_space<vmem>>, vector<16x192xf32>,
    } else {
    }
    %c0 = arith.constant 0 : index
    %c0_1 = arith.constant 0 : index
    %3 = vector.load %arg7[%c0, %c0_1] : memref<16x192xf32, #tpu.memory_space<vmem>>, vector<16x192xf32>
    %c0_2 = arith.constant 0 : index
    %c0_3 = arith.constant 0 : index
    %4 = vector.load %arg3[%c0_2, %c0_3] : memref<16x32xf32, #tpu.memory_space<vmem>>, vector<16x32xf32>
    %c0_4 = arith.constant 0 : index
    %c0_5 = arith.constant 0 : index
    %5 = vector.load %arg4[%c0_4, %c0_5] : memref<32x192xf32, #tpu.memory_space<vmem>>, vector<32x192xf32>
    %cst = arith.constant dense<0.000000e+00> : vector<16x192xf32>
    %6 = tpu.matmul %4, %5, %cst {dimension_numbers = #tpu.dot_dimension_numbers<[1], [0], [0], [1], [0, 0, 1, 1], [], []>} : vector<16x32xf32>, vector<32x192xf32>, vector<16x192xf32> -> vector<16x192xf32>
    %7 = arith.addf %3, %6 : vector<16x192xf32>
    %c0_6 = arith.constant 0 : index
    %c0_7 = arith.constant 0 : index
    %8 = vector.load %arg7[%c0_6, %c0_7] : memref<16x192xf32, #tpu.memory_space<vmem>>, vector<16x192xf32>
    tpu.vector_store %arg7[%c0_6, %c0_7], %7 {strides = array<i32>} : memref<16x192xf32, #tpu.memory_space<vmem>>, vector<16x192xf32>,
    %c0_i32_8 = arith.constant 0 : i32
    %9 = arith.cmpi eq, %arg2, %c0_i32_8 : i32
    %10 = arith.extui %9 : i1 to i32
    %c0_i32_9 = arith.constant 0 : i32
    %11 = arith.cmpi ne, %10, %c0_i32_9 : i32
    scf.if %11 {
      %c0_10 = arith.constant 0 : index
      %c0_11 = arith.constant 0 : index
      %12 = vector.load %arg7[%c0_10, %c0_11] : memref<16x192xf32, #tpu.memory_space<vmem>>, vector<16x192xf32>
      %c0_12 = arith.constant 0 : index
      %c0_13 = arith.constant 0 : index
      %13 = vector.load %arg5[%c0_12, %c0_13] : memref<1x192xf32, #tpu.memory_space<vmem>>, vector<1x192xf32>
      %14 = vector.broadcast %13 : vector<1x192xf32> to vector<16x192xf32>
      %15 = arith.addf %12, %14 : vector<16x192xf32>
      %c0_14 = arith.constant 0 : index
      %c0_15 = arith.constant 0 : index
      %16 = vector.load %arg6[%c0_14, %c0_15] : memref<16x192xf32, #tpu.memory_space<vmem>>, vector<16x192xf32>
      tpu.vector_store %arg6[%c0_14, %c0_15], %15 {strides = array<i32>} : memref<16x192xf32, #tpu.memory_space<vmem>>, vector<16x192xf32>,
    } else {
    }
    return
  }
  func.func @transform_0(%arg0: i32, %arg1: i32, %arg2: i32) -> (i32, i32) {
    %c0_i32 = arith.constant 0 : i32
    return %arg0, %arg2 : i32, i32
  }
  func.func @transform_1(%arg0: i32, %arg1: i32, %arg2: i32) -> (i32, i32) {
    %c0_i32 = arith.constant 0 : i32
    return %arg2, %arg1 : i32, i32
  }
  func.func @transform_2(%arg0: i32, %arg1: i32, %arg2: i32) -> (i32, i32) {
    %c0_i32 = arith.constant 0 : i32
    %c0_i32_0 = arith.constant 0 : i32
    return %c0_i32, %arg1 : i32, i32
  }
  func.func @transform_3(%arg0: i32, %arg1: i32, %arg2: i32) -> (i32, i32) {
    %c0_i32 = arith.constant 0 : i32
    return %arg0, %arg1 : i32, i32
  }
}

module attributes {stable_mosaic.version = 11 : i64} {
  func.func @_groupnorm_gate_kernel(%arg0: i32, %arg1: memref<16x64xf32, #tpu.memory_space<vmem>>, %arg2: memref<16x64xf32, #tpu.memory_space<vmem>>, %arg3: memref<1x64xf32, #tpu.memory_space<vmem>>, %arg4: memref<16x64xf32, #tpu.memory_space<vmem>>) attributes {dimension_semantics = [#tpu.dimension_semantics<parallel>], iteration_bounds = array<i64: 1>, scalar_prefetch = 0 : i64, scratch_operands = 0 : i64, tpu.core_type = #tpu.core_type<tc>, window_params = [{transform_indices = @transform_0, window_bounds = array<i64: 16, 64>}, {transform_indices = @transform_1, window_bounds = array<i64: 16, 64>}, {pipeline_mode = #tpu.pipeline_mode<synchronous>, transform_indices = @transform_2, window_bounds = array<i64: 1, 64>}, {transform_indices = @transform_3, window_bounds = array<i64: 16, 64>}]} {
    %c0 = arith.constant 0 : index
    %c0_0 = arith.constant 0 : index
    %0 = vector.load %arg1[%c0, %c0_0] : memref<16x64xf32, #tpu.memory_space<vmem>>, vector<16x64xf32>
    %c0_1 = arith.constant 0 : index
    %c0_2 = arith.constant 0 : index
    %1 = vector.load %arg2[%c0_1, %c0_2] : memref<16x64xf32, #tpu.memory_space<vmem>>, vector<16x64xf32>
    %2 = vector.extract_strided_slice %0 {offsets = [0, 0], sizes = [16, 32], strides = [1, 1]} : vector<16x64xf32> to vector<16x32xf32>
    %3 = arith.mulf %2, %2 : vector<16x32xf32>
    %cst = arith.constant dense<0.000000e+00> : vector<16xf32>
    %4 = vector.multi_reduction <add>, %3, %cst [1] : vector<16x32xf32> to vector<16xf32>
    %5 = vector.shape_cast %4 : vector<16xf32> to vector<16x1xf32>
    %cst_3 = arith.constant 3.200000e+01 : f32
    %6 = vector.broadcast %cst_3 : f32 to vector<16x1xf32>
    %7 = arith.divf %5, %6 : vector<16x1xf32>
    %cst_4 = arith.constant 9.99999997E-7 : f32
    %8 = vector.broadcast %cst_4 : f32 to vector<16x1xf32>
    %9 = arith.addf %7, %8 : vector<16x1xf32>
    %10 = math.rsqrt %9 : vector<16x1xf32>
    %11 = vector.broadcast %10 : vector<16x1xf32> to vector<16x32xf32>
    %12 = arith.mulf %2, %11 : vector<16x32xf32>
    %13 = vector.extract_strided_slice %0 {offsets = [0, 32], sizes = [16, 32], strides = [1, 1]} : vector<16x64xf32> to vector<16x32xf32>
    %14 = arith.mulf %13, %13 : vector<16x32xf32>
    %cst_5 = arith.constant dense<0.000000e+00> : vector<16xf32>
    %15 = vector.multi_reduction <add>, %14, %cst_5 [1] : vector<16x32xf32> to vector<16xf32>
    %16 = vector.shape_cast %15 : vector<16xf32> to vector<16x1xf32>
    %cst_6 = arith.constant 3.200000e+01 : f32
    %17 = vector.broadcast %cst_6 : f32 to vector<16x1xf32>
    %18 = arith.divf %16, %17 : vector<16x1xf32>
    %cst_7 = arith.constant 9.99999997E-7 : f32
    %19 = vector.broadcast %cst_7 : f32 to vector<16x1xf32>
    %20 = arith.addf %18, %19 : vector<16x1xf32>
    %21 = math.rsqrt %20 : vector<16x1xf32>
    %22 = vector.broadcast %21 : vector<16x1xf32> to vector<16x32xf32>
    %23 = arith.mulf %13, %22 : vector<16x32xf32>
    %24 = tpu.concatenate %12, %23 in 1 : vector<16x32xf32>, vector<16x32xf32> -> vector<16x64xf32>
    %c0_8 = arith.constant 0 : index
    %c0_9 = arith.constant 0 : index
    %25 = vector.load %arg3[%c0_8, %c0_9] : memref<1x64xf32, #tpu.memory_space<vmem>>, vector<1x64xf32>
    %26 = vector.broadcast %25 : vector<1x64xf32> to vector<16x64xf32>
    %27 = arith.mulf %24, %26 : vector<16x64xf32>
    %cst_10 = arith.constant 0.000000e+00 : f32
    %28 = vector.broadcast %cst_10 : f32 to vector<16x64xf32>
    %29 = arith.subf %28, %1 : vector<16x64xf32>
    %30 = math.exp %29 : vector<16x64xf32>
    %cst_11 = arith.constant 1.000000e+00 : f32
    %31 = vector.broadcast %cst_11 : f32 to vector<16x64xf32>
    %32 = arith.addf %31, %30 : vector<16x64xf32>
    %33 = arith.divf %1, %32 : vector<16x64xf32>
    %34 = arith.mulf %33, %27 : vector<16x64xf32>
    %c0_12 = arith.constant 0 : index
    %c0_13 = arith.constant 0 : index
    %35 = vector.load %arg4[%c0_12, %c0_13] : memref<16x64xf32, #tpu.memory_space<vmem>>, vector<16x64xf32>
    tpu.vector_store %arg4[%c0_12, %c0_13], %34 {strides = array<i32>} : memref<16x64xf32, #tpu.memory_space<vmem>>, vector<16x64xf32>,
    return
  }
  func.func @transform_0(%arg0: i32) -> (i32, i32) {
    %c0_i32 = arith.constant 0 : i32
    %c0_i32_0 = arith.constant 0 : i32
    return %arg0, %c0_i32 : i32, i32
  }
  func.func @transform_1(%arg0: i32) -> (i32, i32) {
    %c0_i32 = arith.constant 0 : i32
    %c0_i32_0 = arith.constant 0 : i32
    return %arg0, %c0_i32 : i32, i32
  }
  func.func @transform_2(%arg0: i32) -> (i32, i32) {
    %c0_i32 = arith.constant 0 : i32
    %c0_i32_0 = arith.constant 0 : i32
    %c0_i32_1 = arith.constant 0 : i32
    return %c0_i32, %c0_i32_0 : i32, i32
  }
  func.func @transform_3(%arg0: i32) -> (i32, i32) {
    %c0_i32 = arith.constant 0 : i32
    %c0_i32_0 = arith.constant 0 : i32
    return %arg0, %c0_i32 : i32, i32
  }
}

module attributes {stable_mosaic.version = 11 : i64} {
  func.func @_retention_kernel(%arg0: i32, %arg1: i32, %arg2: memref<1x8x32xf32, #tpu.memory_space<vmem>>, %arg3: memref<1x8x32xf32, #tpu.memory_space<vmem>>, %arg4: memref<1x8x64xf32, #tpu.memory_space<vmem>>, %arg5: memref<8x32xf32, #tpu.memory_space<vmem>>, %arg6: memref<8x32xf32, #tpu.memory_space<vmem>>, %arg7: memref<1x8x64xf32, #tpu.memory_space<vmem>>) attributes {dimension_semantics = [#tpu.dimension_semantics<parallel>, #tpu.dimension_semantics<arbitrary>], iteration_bounds = array<i64: 2, 1>, scalar_prefetch = 0 : i64, scratch_operands = 0 : i64, tpu.core_type = #tpu.core_type<tc>, window_params = [{transform_indices = @transform_0, window_bounds = array<i64: 1, 8, 32>}, {transform_indices = @transform_1, window_bounds = array<i64: 1, 8, 32>}, {transform_indices = @transform_2, window_bounds = array<i64: 1, 8, 64>}, {pipeline_mode = #tpu.pipeline_mode<synchronous>, transform_indices = @transform_3, window_bounds = array<i64: 8, 32>}, {pipeline_mode = #tpu.pipeline_mode<synchronous>, transform_indices = @transform_4, window_bounds = array<i64: 8, 32>}, {transform_indices = @transform_5, window_bounds = array<i64: 1, 8, 64>}]} {
    %c8_i32 = arith.constant 8 : i32
    %0 = arith.muli %arg1, %c8_i32 : i32
    %1 = tpu.assume_multiple %0, 8 : i32
    %c0 = arith.constant 0 : index
    %c0_0 = arith.constant 0 : index
    %c0_1 = arith.constant 0 : index
    %2 = vector.load %arg2[%c0, %c0_0, %c0_1] : memref<1x8x32xf32, #tpu.memory_space<vmem>>, vector<1x8x32xf32>
    %3 = vector.shape_cast %2 : vector<1x8x32xf32> to vector<8x32xf32>
    %4 = arith.index_cast %1 : i32 to index
    %c0_2 = arith.constant 0 : index
    %5 = vector.load %arg5[%4, %c0_2] : memref<8x32xf32, #tpu.memory_space<vmem>>, vector<8x32xf32>
    %6 = arith.index_cast %1 : i32 to index
    %c0_3 = arith.constant 0 : index
    %7 = vector.load %arg6[%6, %c0_3] : memref<8x32xf32, #tpu.memory_space<vmem>>, vector<8x32xf32>
    %8 = tpu.iota {dimensions = array<i32: 1>} : vector<8x32xi32>
    %c2_i32 = arith.constant 2 : i32
    %c0_i32 = arith.constant 0 : i32
    %9 = arith.cmpi eq, %c2_i32, %c0_i32 : i32
    %c1_i32 = arith.constant 1 : i32
    %10 = arith.select %9, %c1_i32, %c2_i32 : i32
    %11 = vector.broadcast %10 : i32 to vector<8x32xi32>
    %12 = arith.remsi %8, %11 : vector<8x32xi32>
    %c0_i32_4 = arith.constant 0 : i32
    %13 = vector.broadcast %c0_i32_4 : i32 to vector<8x32xi32>
    %14 = arith.cmpi ne, %12, %13 : vector<8x32xi32>
    %c0_i32_5 = arith.constant 0 : i32
    %15 = vector.broadcast %c0_i32_5 : i32 to vector<8x32xi32>
    %16 = arith.cmpi slt, %12, %15 : vector<8x32xi32>
    %c0_i32_6 = arith.constant 0 : i32
    %17 = arith.cmpi slt, %10, %c0_i32_6 : i32
    %18 = vector.broadcast %17 : i1 to vector<8x32xi1>
    %19 = vector.broadcast %18 : vector<8x32xi1> to vector<8x32xi1>
    %20 = arith.xori %16, %19 : vector<8x32xi1>
    %21 = arith.andi %20, %14 : vector<8x32xi1>
    %22 = vector.broadcast %10 : i32 to vector<8x32xi32>
    %23 = arith.addi %12, %22 : vector<8x32xi32>
    %24 = arith.select %21, %23, %12 : vector<8x32xi1>, vector<8x32xi32>
    %c0_i32_7 = arith.constant 0 : i32
    %25 = vector.broadcast %c0_i32_7 : i32 to vector<8x32xi32>
    %26 = arith.cmpi eq, %24, %25 : vector<8x32xi32>
    %c31_i32 = arith.constant 31 : i32
    %27 = tpu.dynamic_rotate %3 by %c31_i32 dim 1 : vector<8x32xf32>, i32 -> vector<8x32xf32>
    %c1_i32_8 = arith.constant 1 : i32
    %28 = tpu.dynamic_rotate %3 by %c1_i32_8 dim 1 : vector<8x32xf32>, i32 -> vector<8x32xf32>
    %cst = arith.constant 0.000000e+00 : f32
    %29 = vector.broadcast %cst : f32 to vector<8x32xf32>
    %30 = arith.subf %29, %27 : vector<8x32xf32>
    %31 = arith.select %26, %30, %28 : vector<8x32xi1>, vector<8x32xf32>
    %32 = arith.mulf %3, %5 : vector<8x32xf32>
    %33 = arith.mulf %31, %7 : vector<8x32xf32>
    %34 = arith.addf %32, %33 : vector<8x32xf32>
    %c0_9 = arith.constant 0 : index
    %c0_10 = arith.constant 0 : index
    %c0_11 = arith.constant 0 : index
    %35 = vector.load %arg3[%c0_9, %c0_10, %c0_11] : memref<1x8x32xf32, #tpu.memory_space<vmem>>, vector<1x8x32xf32>
    %36 = vector.shape_cast %35 : vector<1x8x32xf32> to vector<8x32xf32>
    %cst_12 = arith.constant 0.176776692 : f32
    %37 = vector.broadcast %cst_12 : f32 to vector<8x32xf32>
    %38 = arith.mulf %36, %37 : vector<8x32xf32>
    %c0_13 = arith.constant 0 : index
    %c0_14 = arith.constant 0 : index
    %39 = vector.load %arg5[%c0_13, %c0_14] : memref<8x32xf32, #tpu.memory_space<vmem>>, vector<8x32xf32>
    %c0_15 = arith.constant 0 : index
    %c0_16 = arith.constant 0 : index
    %40 = vector.load %arg6[%c0_15, %c0_16] : memref<8x32xf32, #tpu.memory_space<vmem>>, vector<8x32xf32>
    %41 = tpu.iota {dimensions = array<i32: 1>} : vector<8x32xi32>
    %c2_i32_17 = arith.constant 2 : i32
    %c0_i32_18 = arith.constant 0 : i32
    %42 = arith.cmpi eq, %c2_i32_17, %c0_i32_18 : i32
    %c1_i32_19 = arith.constant 1 : i32
    %43 = arith.select %42, %c1_i32_19, %c2_i32_17 : i32
    %44 = vector.broadcast %43 : i32 to vector<8x32xi32>
    %45 = arith.remsi %41, %44 : vector<8x32xi32>
    %c0_i32_20 = arith.constant 0 : i32
    %46 = vector.broadcast %c0_i32_20 : i32 to vector<8x32xi32>
    %47 = arith.cmpi ne, %45, %46 : vector<8x32xi32>
    %c0_i32_21 = arith.constant 0 : i32
    %48 = vector.broadcast %c0_i32_21 : i32 to vector<8x32xi32>
    %49 = arith.cmpi slt, %45, %48 : vector<8x32xi32>
    %c0_i32_22 = arith.constant 0 : i32
    %50 = arith.cmpi slt, %43, %c0_i32_22 : i32
    %51 = vector.broadcast %50 : i1 to vector<8x32xi1>
    %52 = vector.broadcast %51 : vector<8x32xi1> to vector<8x32xi1>
    %53 = arith.xori %49, %52 : vector<8x32xi1>
    %54 = arith.andi %53, %47 : vector<8x32xi1>
    %55 = vector.broadcast %43 : i32 to vector<8x32xi32>
    %56 = arith.addi %45, %55 : vector<8x32xi32>
    %57 = arith.select %54, %56, %45 : vector<8x32xi1>, vector<8x32xi32>
    %c0_i32_23 = arith.constant 0 : i32
    %58 = vector.broadcast %c0_i32_23 : i32 to vector<8x32xi32>
    %59 = arith.cmpi eq, %57, %58 : vector<8x32xi32>
    %c31_i32_24 = arith.constant 31 : i32
    %60 = tpu.dynamic_rotate %38 by %c31_i32_24 dim 1 : vector<8x32xf32>, i32 -> vector<8x32xf32>
    %c1_i32_25 = arith.constant 1 : i32
    %61 = tpu.dynamic_rotate %38 by %c1_i32_25 dim 1 : vector<8x32xf32>, i32 -> vector<8x32xf32>
    %cst_26 = arith.constant 0.000000e+00 : f32
    %62 = vector.broadcast %cst_26 : f32 to vector<8x32xf32>
    %63 = arith.subf %62, %60 : vector<8x32xf32>
    %64 = arith.select %59, %63, %61 : vector<8x32xi1>, vector<8x32xf32>
    %65 = arith.mulf %38, %39 : vector<8x32xf32>
    %66 = arith.mulf %64, %40 : vector<8x32xf32>
    %67 = arith.addf %65, %66 : vector<8x32xf32>
    %c0_27 = arith.constant 0 : index
    %c0_28 = arith.constant 0 : index
    %c0_29 = arith.constant 0 : index
    %68 = vector.load %arg4[%c0_27, %c0_28, %c0_29] : memref<1x8x64xf32, #tpu.memory_space<vmem>>, vector<1x8x64xf32>
    %69 = vector.shape_cast %68 : vector<1x8x64xf32> to vector<8x64xf32>
    %70 = tpu.iota {dimensions = array<i32: 0>} : vector<8x8xi32>
    %71 = vector.broadcast %1 : i32 to vector<8x8xi32>
    %72 = arith.addi %70, %71 : vector<8x8xi32>
    %73 = arith.sitofp %72 : vector<8x8xi32> to vector<8x8xf32>
    %74 = tpu.iota {dimensions = array<i32: 1>} : vector<8x8xi32>
    %75 = arith.sitofp %74 : vector<8x8xi32> to vector<8x8xf32>
    %76 = arith.subf %73, %75 : vector<8x8xf32>
    %cst_30 = arith.constant 0.000000e+00 : f32
    %77 = vector.broadcast %cst_30 : f32 to vector<8x8xf32>
    %78 = arith.cmpf oge, %76, %77 : vector<8x8xf32>
    %cst_31 = arith.constant 0.000000e+00 : f32
    %79 = vector.broadcast %cst_31 : f32 to vector<8x8xf32>
    %80 = arith.maximumf %76, %79 : vector<8x8xf32>
    %81 = vector.extract_strided_slice %34 {offsets = [0, 0], sizes = [8, 16], strides = [1, 1]} : vector<8x32xf32> to vector<8x16xf32>
    %82 = vector.extract_strided_slice %67 {offsets = [0, 0], sizes = [8, 16], strides = [1, 1]} : vector<8x32xf32> to vector<8x16xf32>
    %83 = vector.extract_strided_slice %69 {offsets = [0, 0], sizes = [8, 32], strides = [1, 1]} : vector<8x64xf32> to vector<8x32xf32>
    %cst_32 = arith.constant -0.0317486972 : f32
    %84 = vector.broadcast %cst_32 : f32 to vector<8x8xf32>
    %85 = arith.mulf %84, %80 : vector<8x8xf32>
    %86 = math.exp %85 : vector<8x8xf32>
    %cst_33 = arith.constant 0.000000e+00 : f32
    %87 = vector.broadcast %cst_33 : f32 to vector<8x8xf32>
    %88 = arith.select %78, %86, %87 : vector<8x8xi1>, vector<8x8xf32>
    %cst_34 = arith.constant dense<0.000000e+00> : vector<8xf32>
    %89 = vector.multi_reduction <add>, %88, %cst_34 [1] : vector<8x8xf32> to vector<8xf32>
    %90 = vector.shape_cast %89 : vector<8xf32> to vector<8x1xf32>
    %91 = math.rsqrt %90 : vector<8x1xf32>
    %cst_35 = arith.constant dense<0.000000e+00> : vector<8x8xf32>
    %92 = tpu.matmul %81, %82, %cst_35 {dimension_numbers = #tpu.dot_dimension_numbers<[1], [1], [0], [0], [0, 0, 1, 0], [], []>} : vector<8x16xf32>, vector<8x16xf32>, vector<8x8xf32> -> vector<8x8xf32>
    %93 = vector.broadcast %91 : vector<8x1xf32> to vector<8x8xf32>
    %94 = arith.mulf %88, %93 : vector<8x8xf32>
    %95 = arith.mulf %92, %94 : vector<8x8xf32>
    %96 = math.absf %95 : vector<8x8xf32>
    %cst_36 = arith.constant dense<0.000000e+00> : vector<8xf32>
    %97 = vector.multi_reduction <add>, %96, %cst_36 [1] : vector<8x8xf32> to vector<8xf32>
    %98 = vector.shape_cast %97 : vector<8xf32> to vector<8x1xf32>
    %cst_37 = arith.constant 1.000000e+00 : f32
    %cst_38 = arith.constant 5.000000e+04 : f32
    %99 = vector.broadcast %cst_37 : f32 to vector<8x1xf32>
    %100 = arith.maximumf %99, %98 : vector<8x1xf32>
    %101 = vector.broadcast %cst_38 : f32 to vector<8x1xf32>
    %102 = arith.minimumf %101, %100 : vector<8x1xf32>
    %103 = tpu.reciprocal %102 {approx = true} : vector<8x1xf32> -> vector<8x1xf32>
    %104 = vector.broadcast %103 : vector<8x1xf32> to vector<8x8xf32>
    %105 = arith.mulf %95, %104 : vector<8x8xf32>
    %cst_39 = arith.constant dense<0.000000e+00> : vector<8x32xf32>
    %106 = tpu.matmul %105, %83, %cst_39 {dimension_numbers = #tpu.dot_dimension_numbers<[1], [0], [0], [1], [0, 0, 1, 1], [], []>} : vector<8x8xf32>, vector<8x32xf32>, vector<8x32xf32> -> vector<8x32xf32>
    %107 = vector.extract_strided_slice %34 {offsets = [0, 16], sizes = [8, 16], strides = [1, 1]} : vector<8x32xf32> to vector<8x16xf32>
    %108 = vector.extract_strided_slice %67 {offsets = [0, 16], sizes = [8, 16], strides = [1, 1]} : vector<8x32xf32> to vector<8x16xf32>
    %109 = vector.extract_strided_slice %69 {offsets = [0, 32], sizes = [8, 32], strides = [1, 1]} : vector<8x64xf32> to vector<8x32xf32>
    %cst_40 = arith.constant -0.0157483574 : f32
    %110 = vector.broadcast %cst_40 : f32 to vector<8x8xf32>
    %111 = arith.mulf %110, %80 : vector<8x8xf32>
    %112 = math.exp %111 : vector<8x8xf32>
    %cst_41 = arith.constant 0.000000e+00 : f32
    %113 = vector.broadcast %cst_41 : f32 to vector<8x8xf32>
    %114 = arith.select %78, %112, %113 : vector<8x8xi1>, vector<8x8xf32>
    %cst_42 = arith.constant dense<0.000000e+00> : vector<8xf32>
    %115 = vector.multi_reduction <add>, %114, %cst_42 [1] : vector<8x8xf32> to vector<8xf32>
    %116 = vector.shape_cast %115 : vector<8xf32> to vector<8x1xf32>
    %117 = math.rsqrt %116 : vector<8x1xf32>
    %cst_43 = arith.constant dense<0.000000e+00> : vector<8x8xf32>
    %118 = tpu.matmul %107, %108, %cst_43 {dimension_numbers = #tpu.dot_dimension_numbers<[1], [1], [0], [0], [0, 0, 1, 0], [], []>} : vector<8x16xf32>, vector<8x16xf32>, vector<8x8xf32> -> vector<8x8xf32>
    %119 = vector.broadcast %117 : vector<8x1xf32> to vector<8x8xf32>
    %120 = arith.mulf %114, %119 : vector<8x8xf32>
    %121 = arith.mulf %118, %120 : vector<8x8xf32>
    %122 = math.absf %121 : vector<8x8xf32>
    %cst_44 = arith.constant dense<0.000000e+00> : vector<8xf32>
    %123 = vector.multi_reduction <add>, %122, %cst_44 [1] : vector<8x8xf32> to vector<8xf32>
    %124 = vector.shape_cast %123 : vector<8xf32> to vector<8x1xf32>
    %cst_45 = arith.constant 1.000000e+00 : f32
    %cst_46 = arith.constant 5.000000e+04 : f32
    %125 = vector.broadcast %cst_45 : f32 to vector<8x1xf32>
    %126 = arith.maximumf %125, %124 : vector<8x1xf32>
    %127 = vector.broadcast %cst_46 : f32 to vector<8x1xf32>
    %128 = arith.minimumf %127, %126 : vector<8x1xf32>
    %129 = tpu.reciprocal %128 {approx = true} : vector<8x1xf32> -> vector<8x1xf32>
    %130 = vector.broadcast %129 : vector<8x1xf32> to vector<8x8xf32>
    %131 = arith.mulf %121, %130 : vector<8x8xf32>
    %cst_47 = arith.constant dense<0.000000e+00> : vector<8x32xf32>
    %132 = tpu.matmul %131, %109, %cst_47 {dimension_numbers = #tpu.dot_dimension_numbers<[1], [0], [0], [1], [0, 0, 1, 1], [], []>} : vector<8x8xf32>, vector<8x32xf32>, vector<8x32xf32> -> vector<8x32xf32>
    %133 = tpu.concatenate %106, %132 in 1 : vector<8x32xf32>, vector<8x32xf32> -> vector<8x64xf32>
    %c0_48 = arith.constant 0 : index
    %c0_49 = arith.constant 0 : index
    %c0_50 = arith.constant 0 : index
    %134 = vector.load %arg7[%c0_48, %c0_49, %c0_50] : memref<1x8x64xf32, #tpu.memory_space<vmem>>, vector<1x8x64xf32>
    %135 = vector.shape_cast %134 : vector<1x8x64xf32> to vector<8x64xf32>
    %136 = vector.shape_cast %133 : vector<8x64xf32> to vector<1x8x64xf32>
    tpu.vector_store %arg7[%c0_48, %c0_49, %c0_50], %136 {strides = array<i32>} : memref<1x8x64xf32, #tpu.memory_space<vmem>>, vector<1x8x64xf32>,
    return
  }
  func.func @transform_0(%arg0: i32, %arg1: i32) -> (i32, i32, i32) {
    %c0_i32 = arith.constant 0 : i32
    %c0_i32_0 = arith.constant 0 : i32
    return %arg0, %arg1, %c0_i32 : i32, i32, i32
  }
  func.func @transform_1(%arg0: i32, %arg1: i32) -> (i32, i32, i32) {
    %c0_i32 = arith.constant 0 : i32
    %c0_i32_0 = arith.constant 0 : i32
    %c0_i32_1 = arith.constant 0 : i32
    return %arg0, %c0_i32, %c0_i32_0 : i32, i32, i32
  }
  func.func @transform_2(%arg0: i32, %arg1: i32) -> (i32, i32, i32) {
    %c0_i32 = arith.constant 0 : i32
    %c0_i32_0 = arith.constant 0 : i32
    %c0_i32_1 = arith.constant 0 : i32
    return %arg0, %c0_i32, %c0_i32_0 : i32, i32, i32
  }
  func.func @transform_3(%arg0: i32, %arg1: i32) -> (i32, i32) {
    %c0_i32 = arith.constant 0 : i32
    %c0_i32_0 = arith.constant 0 : i32
    %c0_i32_1 = arith.constant 0 : i32
    return %c0_i32, %c0_i32_0 : i32, i32
  }
  func.func @transform_4(%arg0: i32, %arg1: i32) -> (i32, i32) {
    %c0_i32 = arith.constant 0 : i32
    %c0_i32_0 = arith.constant 0 : i32
    %c0_i32_1 = arith.constant 0 : i32
    return %c0_i32, %c0_i32_0 : i32, i32
  }
  func.func @transform_5(%arg0: i32, %arg1: i32) -> (i32, i32, i32) {
    %c0_i32 = arith.constant 0 : i32
    %c0_i32_0 = arith.constant 0 : i32
    return %arg0, %arg1, %c0_i32 : i32, i32, i32
  }
}

module attributes {stable_mosaic.version = 11 : i64} {
  func.func @_linear_kernel(%arg0: i32, %arg1: i32, %arg2: i32, %arg3: memref<16x64xf32, #tpu.memory_space<vmem>>, %arg4: memref<64x32xf32, #tpu.memory_space<vmem>>, %arg5: memref<1x32xf32, #tpu.memory_space<vmem>>, %arg6: memref<16x32xf32, #tpu.memory_space<vmem>>, %arg7: memref<16x32xf32, #tpu.memory_space<vmem>>) attributes {dimension_semantics = [#tpu.dimension_semantics<parallel>, #tpu.dimension_semantics<parallel>, #tpu.dimension_semantics<arbitrary>], iteration_bounds = array<i64: 1, 1, 1>, scalar_prefetch = 0 : i64, scratch_operands = 1 : i64, tpu.core_type = #tpu.core_type<tc>, window_params = [{transform_indices = @transform_0, window_bounds = array<i64: 16, 64>}, {transform_indices = @transform_1, window_bounds = array<i64: 64, 32>}, {transform_indices = @transform_2, window_bounds = array<i64: 1, 32>}, {transform_indices = @transform_3, window_bounds = array<i64: 16, 32>}]} {
    %c0_i32 = arith.constant 0 : i32
    %0 = arith.cmpi eq, %arg2, %c0_i32 : i32
    %1 = arith.extui %0 : i1 to i32
    %c0_i32_0 = arith.constant 0 : i32
    %2 = arith.cmpi ne, %1, %c0_i32_0 : i32
    scf.if %2 {
      %cst_10 = arith.constant 0.000000e+00 : f32
      %12 = vector.broadcast %cst_10 : f32 to vector<16x32xf32>
      %c0_11 = arith.constant 0 : index
      %c0_12 = arith.constant 0 : index
      %13 = vector.load %arg7[%c0_11, %c0_12] : memref<16x32xf32, #tpu.memory_space<vmem>>, vector<16x32xf32>
      tpu.vector_store %arg7[%c0_11, %c0_12], %12 {strides = array<i32>} : memref<16x32xf32, #tpu.memory_space<vmem>>, vector<16x32xf32>,
    } else {
    }
    %c0 = arith.constant 0 : index
    %c0_1 = arith.constant 0 : index
    %3 = vector.load %arg7[%c0, %c0_1] : memref<16x32xf32, #tpu.memory_space<vmem>>, vector<16x32xf32>
    %c0_2 = arith.constant 0 : index
    %c0_3 = arith.constant 0 : index
    %4 = vector.load %arg3[%c0_2, %c0_3] : memref<16x64xf32, #tpu.memory_space<vmem>>, vector<16x64xf32>
    %c0_4 = arith.constant 0 : index
    %c0_5 = arith.constant 0 : index
    %5 = vector.load %arg4[%c0_4, %c0_5] : memref<64x32xf32, #tpu.memory_space<vmem>>, vector<64x32xf32>
    %cst = arith.constant dense<0.000000e+00> : vector<16x32xf32>
    %6 = tpu.matmul %4, %5, %cst {dimension_numbers = #tpu.dot_dimension_numbers<[1], [0], [0], [1], [0, 0, 1, 1], [], []>} : vector<16x64xf32>, vector<64x32xf32>, vector<16x32xf32> -> vector<16x32xf32>
    %7 = arith.addf %3, %6 : vector<16x32xf32>
    %c0_6 = arith.constant 0 : index
    %c0_7 = arith.constant 0 : index
    %8 = vector.load %arg7[%c0_6, %c0_7] : memref<16x32xf32, #tpu.memory_space<vmem>>, vector<16x32xf32>
    tpu.vector_store %arg7[%c0_6, %c0_7], %7 {strides = array<i32>} : memref<16x32xf32, #tpu.memory_space<vmem>>, vector<16x32xf32>,
    %c0_i32_8 = arith.constant 0 : i32
    %9 = arith.cmpi eq, %arg2, %c0_i32_8 : i32
    %10 = arith.extui %9 : i1 to i32
    %c0_i32_9 = arith.constant 0 : i32
    %11 = arith.cmpi ne, %10, %c0_i32_9 : i32
    scf.if %11 {
      %c0_10 = arith.constant 0 : index
      %c0_11 = arith.constant 0 : index
      %12 = vector.load %arg7[%c0_10, %c0_11] : memref<16x32xf32, #tpu.memory_space<vmem>>, vector<16x32xf32>
      %c0_12 = arith.constant 0 : index
      %c0_13 = arith.constant 0 : index
      %13 = vector.load %arg5[%c0_12, %c0_13] : memref<1x32xf32, #tpu.memory_space<vmem>>, vector<1x32xf32>
      %14 = vector.broadcast %13 : vector<1x32xf32> to vector<16x32xf32>
      %15 = arith.addf %12, %14 : vector<16x32xf32>
      %c0_14 = arith.constant 0 : index
      %c0_15 = arith.constant 0 : index
      %16 = vector.load %arg6[%c0_14, %c0_15] : memref<16x32xf32, #tpu.memory_space<vmem>>, vector<16x32xf32>
      tpu.vector_store %arg6[%c0_14, %c0_15], %15 {strides = array<i32>} : memref<16x32xf32, #tpu.memory_space<vmem>>, vector<16x32xf32>,
    } else {
    }
    return
  }
  func.func @transform_0(%arg0: i32, %arg1: i32, %arg2: i32) -> (i32, i32) {
    %c0_i32 = arith.constant 0 : i32
    return %arg0, %arg2 : i32, i32
  }
  func.func @transform_1(%arg0: i32, %arg1: i32, %arg2: i32) -> (i32, i32) {
    %c0_i32 = arith.constant 0 : i32
    return %arg2, %arg1 : i32, i32
  }
  func.func @transform_2(%arg0: i32, %arg1: i32, %arg2: i32) -> (i32, i32) {
    %c0_i32 = arith.constant 0 : i32
    %c0_i32_0 = arith.constant 0 : i32
    return %c0_i32, %arg1 : i32, i32
  }
  func.func @transform_3(%arg0: i32, %arg1: i32, %arg2: i32) -> (i32, i32) {
    %c0_i32 = arith.constant 0 : i32
    return %arg0, %arg1 : i32, i32
  }
}

</mosaic_0001>

<bundles_post_ra>
// kernel: tile.16
= control target key start
LH: loop header
LB: loop body
LE: loop exit
PB: predicated region body
PF: predicated region fallthrough
CT: control target
= control target key end

     0   :  { %s22_s0 = inlined_call_operand.vmem [shape: f32[32], index: 0, kind: input, shape index: {}]   ;;  %s23_s1 = inlined_call_operand.vmem [shape: f32[2,32], index: 1, kind: output, shape index: {}]  }
   0x1   :  { %v4_v0 = vld [vmem:[%s22_s0] ss:$0 sm:$0xff] }
   0x2   :  { %5 = vst [vmem:[%s23_s1] sm:$0x3] %v4_v0 }

// kernel: tile.17
= control target key start
LH: loop header
LB: loop body
LE: loop exit
PB: predicated region body
PF: predicated region fallthrough
CT: control target
= control target key end

     0   :  { %vm7_vm0 = vcmask 261120   ;;  %vm13_vm1 = vcmask 523520   ;;  %s39_s0 = inlined_call_operand.vmem [shape: f32[2,32], index: 0, kind: input, shape index: {}]   ;;  %s40_s1 = inlined_call_operand.vmem [shape: f32[1,64], index: 1, kind: output, shape index: {}]  }
   0x1   :  { %v4_v0 = vld [vmem:[%s39_s0] sm:$0x3]  ;;  %s22_s0 = smov 32  }
   0x2   :  { %5 = vst [vmem:[#allocation1] sm:$0x3] %v4_v0 }
   0x9   :  { %v10_v1 = vld [vmem:[#allocation1 + $0x1] sm:$0x1]   ;;  %v6_v2 = vld [vmem:[#allocation1] sm:$0x1]  }
   0xa   :  { %11 = vrot.lane.b32.xlu0 %v10_v1, %s22_s0  ;;  %8 = vst.msk [vmem:[#allocation0] sm:$0x1] %vm7_vm0, %v6_v2  }
  0x7c   :  { %v12_v3 = vpop.permute.xlu0 %11  }
  0x7d   :  { %14 = vst.msk [vmem:[#allocation0] sm:$0x1] %vm13_vm1, %v12_v3  }
  0x84   :  { %v18_v4 = vld [vmem:[#allocation0] sm:$0x1] }
  0x85   :  { %20 = vst [vmem:[%s40_s1] sm:$0x1] %v18_v4 }

// kernel: retention_forward.4
= control target key start
LH: loop header
LB: loop body
LE: loop exit
PB: predicated region body
PF: predicated region fallthrough
CT: control target
= control target key end

     0   :  { %8 = vsyncpa [#allocation4], 0  ;;  %s218_s12 = smov [#allocation3]   ;;  %s281_s0 = inlined_call_operand.vmem [shape: f32[16,32], index: 0, kind: input, shape index: {}]   ;;  %s282_s1 = inlined_call_operand.hbm [shape: f32[32,192], index: 1, kind: input, shape index: {}]   ;;  %s283_s2 = inlined_call_operand.vmem [shape: f32[1,192], index: 2, kind: input, shape index: {}]   ;;  %s284_s3 = inlined_call_operand.vmem [shape: f32[16,192], index: 3, kind: output, shape index: {}]  }
   0x1   :  { %s16_s13 = sshll.u32 %s218_s12, 4  ;;  %s194_s16 = scalar_lea.hbm %s282_s1, 1024  ;;  %s17_s13 = int_to_ptr.vmem [resolvable:$true] %s16_s13 }
   0x2   :  { %p195_p0 = scmp.ne.s32.totalorder %s282_s1, %s194_s16  ;;  %p198_p1 = scmp.lt.u32.totalorder %s194_s16, %s282_s1 }
   0x4   :  { %p200_p2 = pnand %p198_p1, %p195_p0 }
   0x6   :  { %203 = shalt.err (!%p200_p2)
}
   0x7   :  { %s204_s21 = scalar_lea.vmem %s17_s13, 1024  ;;  %p209_p4 = scmp.lt.s32.totalorder %s17_s13, %s17_s13 }
   0x8   :  { %p205_p3 = scmp.ne.s32.totalorder %s17_s13, %s204_s21  ;;  %p210_p5 = scmp.lt.s32.totalorder %s204_s21, %s204_s21 }
   0xa   :  { %p211_p6 = por %p210_p5, %p209_p4 }
   0xc   :  { %p212_p7 = pnand %p211_p6, %p205_p3 }
   0xe   :  { %215 = shalt.err (!%p212_p7)
}
   0xf   :  { %s219_s22 = smov 256   ;;  %s220_s23 = smov 16  }
  0x10   :  { %22 = dma.hbm_to_vmem [thread:$0]  %s282_s1, 1024, %s17_s13, [#allocation4], %s219_s22, %s219_s22, %s220_s23  }
  0x11   :  { %216 = dma.done.wait [#allocation4], 1024  }
  0x12   :  { %217 = vsyncadd [#allocation4], 4294966272  ;;  %v221_v0 = vmov 0.0   ;;  %v44_v1 = vld [vmem:[#allocation3 + $0x8] sm:$0xff]  ;;  %v46_v2 = vld [vmem:[#allocation3 + $0x18] sm:$0xff]  ;;  %vm51_vm0 = vcmask 261120   ;;  %v153_v15 = vlaneseq }
  0x13   :  { %122 = vmatprep.mubr.f32.mxu0 %v221_v0  ;;  %128 = vmatprep.mubr.f32.mxu1 %v221_v0  ;;  %v43_v3 = vld [vmem:[#allocation3] sm:$0xff]  ;;  %v178_v4 = vpack.c.bf16 %v46_v2, %v44_v1  ;;  %v45_v5 = vld [vmem:[#allocation3 + $0x10] sm:$0xff]  ;;  %v48_v6 = vld [vmem:[#allocation3 + $0x28] sm:$0xff]  ;;  %vm33_vm1 = vcmask 523264  }
  0x14   :  { %v50_v7 = vld [vmem:[#allocation3 + $0x38] sm:$0xff]  ;;  %v180_v8 = vpack.c.bf16 %v45_v5, %v43_v3  ;;  %v47_v10 = vld [vmem:[#allocation3 + $0x20] sm:$0xff]  ;;  %v49_v11 = vld [vmem:[#allocation3 + $0x30] sm:$0xff]  ;;  %34 = vst.msk [vmem:[#allocation2 + $0x8] sm:$0xff] %vm33_vm1, %v221_v0  ;;  %v154_v16 = vshrl.u32 %v153_v15, 7 }
  0x15   :  { %v182_v9 = vpack.c.bf16 %v50_v7, %v48_v6  ;;  %179 = vmatprep.subr.bf16.mxu0 %v178_v4  ;;  %186 = vmatprep.subr.bf16.mxu1 %v178_v4  ;;  %v184_v12 = vpack.c.bf16 %v49_v11, %v47_v10  ;;  %v41_v13 = vld [vmem:[%s281_s0] sm:$0xff]  ;;  %v42_v14 = vld [vmem:[%s281_s0 + $0x8] sm:$0xff]  ;;  %36 = vst.msk [vmem:[#allocation2 + $0x18] sm:$0xff] %vm33_vm1, %v221_v0 }
  0x16   :  { %181 = vmatpush1.bf16.msra.mxu0 %v180_v8  ;;  %188 = vmatpush1.bf16.msra.mxu1 %v180_v8  ;;  %v155_v17 = vsub.s32 0, %v154_v16  ;;  %v151_v18 = vld [vmem:[%s283_s2] sm:$0x3]  ;;  %v159_v30 = vsub.s32 1, %v154_v16 }
  0x17   :  { %183 = vmatprep.subr.bf16.mxu0 %v182_v9  ;;  %187 = vmatprep.subr.bf16.mxu1 %v182_v9 }
  0x18   :  { %v156_v20 = vrot.slane %v151_v18, %v155_v17  ;;  %v160_v31 = vrot.slane %v151_v18, %v159_v30 }
  0x1a   :  { %185 = vmatpush1.bf16.msra.mxu0 %v184_v12  ;;  %189 = vmatpush1.bf16.msra.mxu1 %v184_v12 }
  0x1b   :  { %v38_v19 = vld [vmem:[#allocation2 + $0x8] sm:$0xff] }
  0x1c   :  { %v40_v21 = vld [vmem:[#allocation2 + $0x18] sm:$0xff] }
  0x1d   :  { %176 = vmatmul.mubr.msk.f32.vlgmr.msra.gmra.mrb[0].mxu0 %vm51_vm0, %v41_v13  ;;  %177 = vmatmul.mubr.msk.f32.vlgmr.msra.gmra.mrb[0].mxu1 %vm51_vm0, %v42_v14 }
  0xf0   :  { %v124_v22 = vpop.f32.mrb[0].mxu0  ;;  %v130_v23 = vpop.f32.mrb[0].mxu1 }
  0xf1   :  { %v126_v24 = vpop.f32.mrb[1].mxu0  ;;  %v132_v25 = vpop.f32.mrb[1].mxu1  ;;  %v163_v28 = vadd.f32 %v156_v20, %v124_v22  ;;  %v165_v29 = vadd.f32 %v156_v20, %v130_v23 }
  0xf2   :  { %v136_v26 = vadd.f32 %v126_v24, %v38_v19  ;;  %v138_v27 = vadd.f32 %v132_v25, %v40_v21 }
  0xf3   :  { %167 = vst [vmem:[%s284_s3] sm:$0xff] %v163_v28  ;;  %169 = vst [vmem:[%s284_s3 + $0x10] sm:$0xff] %v165_v29 }
  0xf4   :  { %141 = vst.msk [vmem:[#allocation2 + $0x8] sm:$0xff] %vm33_vm1, %v136_v26  ;;  %143 = vst.msk [vmem:[#allocation2 + $0x18] sm:$0xff] %vm33_vm1, %v138_v27 }
  0xfb   :  { %v148_v32 = vld [vmem:[#allocation2 + $0x8] sm:$0xff]  ;;  %v150_v33 = vld [vmem:[#allocation2 + $0x18] sm:$0xff] }
  0xfc   :  { %v164_v34 = vadd.f32 %v160_v31, %v148_v32  ;;  %v166_v35 = vadd.f32 %v160_v31, %v150_v33 }
  0xfe   :  { %168 = vst.msk [vmem:[%s284_s3 + $0x8] sm:$0xff] %vm33_vm1, %v164_v34  ;;  %170 = vst.msk [vmem:[%s284_s3 + $0x18] sm:$0xff] %vm33_vm1, %v166_v35 }
  0xff   :  { %175 = vsyncpa [#allocation4], 1 }

// kernel: retention_forward.6
= control target key start
LH: loop header
LB: loop body
LE: loop exit
PB: predicated region body
PF: predicated region fallthrough
CT: control target
= control target key end

     0   :  { %vm20_vm0 = vcmask 261120   ;;  %s108_s16 = smov 96   ;;  %vm83_vm1 = vcmask 523264   ;;  %s162_s0 = inlined_call_operand.vmem [shape: f32[16,64], index: 0, kind: input, shape index: {}]   ;;  %s163_s1 = inlined_call_operand.vmem [shape: f32[16,64], index: 1, kind: input, shape index: {}]   ;;  %s164_s2 = inlined_call_operand.vmem [shape: f32[1,64], index: 2, kind: input, shape index: {}]   ;;  %s165_s3 = inlined_call_operand.vmem [shape: f32[16,64], index: 3, kind: output, shape index: {}]  }
   0x1   :  { %v14_v0 = vld [vmem:[%s162_s0] sm:$0xff]  ;;  %v135_v1 = vld [vmem:[%s162_s0 + $0x8] sm:$0xff] }
   0x2   :  { %v18_v2 = vmul.f32 %v14_v0, %v14_v0  ;;  %v19_v3 = vmul.f32 %v135_v1, %v135_v1  ;;  %v16_v10 = vld [vmem:[%s163_s1] sm:$0xff]  ;;  %v17_v12 = vld [vmem:[%s163_s1 + $0x8] sm:$0xff] }
   0x3   :  { %v69_v11 = vsub.f32 0.0, %v16_v10  ;;  %v70_v14 = vsub.f32 0.0, %v17_v12  ;;  %v90_v36 = vld [vmem:[%s164_s2] ss:$0 sm:$0xff] }
   0x4   :  { %38 = vrot.lane.b32.xlu0 %v18_v2, %s108_s16  ;;  %v21_v4 = vsel %vm20_vm0, %v18_v2, 0.0  ;;  %v24_v5 = vsel %vm20_vm0, %v19_v3, 0.0 }
   0x5   :  { %22 = vadd.xlane.f32.xlu1 %v21_v4  ;;  %v71_v13 = vmul.f32 1.442695, %v69_v11  ;;  %v73_v15 = vmul.f32 1.442695, %v70_v14 }
   0x7   :  { %92 = vpow2.f32 %v71_v13 }
   0x8   :  { %40 = vrot.lane.b32.xlu0 %v19_v3, %s108_s16  ;;  %94 = vpow2.f32 %v73_v15 }
   0x9   :  { %25 = vadd.xlane.f32.xlu1 %v24_v5 }
  0x11   :  { %v93_v19 = vpop.eup %92 }
  0x12   :  { %v75_v22 = vadd.f32 1.0, %v93_v19  ;;  %v95_v24 = vpop.eup %94 }
  0x13   :  { %v76_v28 = vadd.f32 1.0, %v95_v24 }
  0x76   :  { %v39_v6 = vpop.permute.xlu0 %38 }
  0x77   :  { %v44_v7 = vsel %vm20_vm0, %v39_v6, 0.0 }
  0x78   :  { %45 = vadd.xlane.f32.xlu0 %v44_v7 }
  0x7a   :  { %v41_v8 = vpop.permute.xlu0 %40 }
  0x7b   :  { %v47_v9 = vsel %vm20_vm0, %v41_v8, 0.0 }
  0x7c   :  { %48 = vadd.xlane.f32.xlu1 %v47_v9 }
  0x92   :  { %v23_v16 = vpop.xlane.xlu1 %22 }
  0x93   :  { %v28_v17 = vmul.f32 0.03125, %v23_v16 }
  0x95   :  { %v30_v20 = vadd.f32 1e-06, %v28_v17 }
  0x96   :  { %v26_v18 = vpop.xlane.xlu1 %25 }
  0x97   :  { %v29_v21 = vmul.f32 0.03125, %v26_v18  ;;  %96 = vrsqrt.f32 %v30_v20 }
  0x98   :  { %98 = vrcp.f32 %v75_v22 }
  0x99   :  { %v31_v27 = vadd.f32 1e-06, %v29_v21 }
  0xa1   :  { %v97_v32 = vpop.eup %96 }
  0xa2   :  { %v99_v33 = vpop.eup %98  ;;  %v34_v35 = vmul.f32 %v97_v32, %v14_v0 }
  0xa3   :  { %v78_v39 = vmul.f32 %v99_v33, %v16_v10 }
 0x105   :  { %v46_v23 = vpop.xlane.xlu0 %45 }
 0x106   :  { %v50_v25 = vmul.f32 0.03125, %v46_v23 }
 0x108   :  { %v52_v26 = vadd.f32 1e-06, %v50_v25 }
 0x109   :  { %v49_v29 = vpop.xlane.xlu1 %48 }
 0x10a   :  { %100 = vrsqrt.f32 %v52_v26  ;;  %v51_v30 = vmul.f32 0.03125, %v49_v29 }
 0x10b   :  { %102 = vrsqrt.f32 %v31_v27 }
 0x10c   :  { %v53_v31 = vadd.f32 1e-06, %v51_v30  ;;  %104 = vrcp.f32 %v76_v28 }
 0x10e   :  { %106 = vrsqrt.f32 %v53_v31 }
 0x114   :  { %v101_v34 = vpop.eup %100 }
 0x115   :  { %v56_v37 = vmul.f32 %v101_v34, %v14_v0  ;;  %v103_v38 = vpop.eup %102 }
 0x116   :  { %v105_v40 = vpop.eup %104  ;;  %v35_v44 = vmul.f32 %v103_v38, %v135_v1 }
 0x117   :  { %v58_v41 = vsel %vm20_vm0, %v34_v35, %v56_v37  ;;  %v80_v47 = vmul.f32 %v105_v40, %v17_v12 }
 0x118   :  { %v107_v42 = vpop.eup %106  ;;  %v67_v43 = vmul.f32 %v90_v36, %v58_v41 }
 0x119   :  { %v57_v45 = vmul.f32 %v107_v42, %v135_v1 }
 0x11a   :  { %v81_v46 = vmul.f32 %v78_v39, %v67_v43 }
 0x11b   :  { %v59_v48 = vsel %vm20_vm0, %v35_v44, %v57_v45 }
 0x11c   :  { %84 = vst.msk [vmem:[%s165_s3] sm:$0xff] %vm83_vm1, %v81_v46  ;;  %v68_v49 = vmul.f32 %v90_v36, %v59_v48 }
 0x11e   :  { %v82_v50 = vmul.f32 %v80_v47, %v68_v49 }
 0x120   :  { %85 = vst.msk [vmem:[%s165_s3 + $0x8] sm:$0xff] %vm83_vm1, %v82_v50 }

// kernel: retention_forward.7
= control target key start
LH: loop header
LB: loop body
LE: loop exit
PB: predicated region body
PF: predicated region fallthrough
CT: control target
= control target key end

     0   :  { %vm34_vm0 = vcmask 523264   ;;  %vm19_vm1 = vcmask 261120   ;;  %v229_v5 = vmov 0.0   ;;  %s306_s0 = inlined_call_operand.vmem [shape: f32[16,64], index: 0, kind: input, shape index: {}]   ;;  %s307_s1 = inlined_call_operand.vmem [shape: f32[64,32], index: 1, kind: input, shape index: {}]   ;;  %s308_s2 = inlined_call_operand.vmem [shape: f32[1,32], index: 2, kind: input, shape index: {}]   ;;  %s309_s3 = inlined_call_operand.hbm [shape: f32[16,32], index: 3, kind: output, shape index: {}]  }
   0x1   :  { %v26_v0 = vld [vmem:[%s307_s1] sm:$0xff]  ;;  %v27_v1 = vld [vmem:[%s307_s1 + $0x8] sm:$0xff]  ;;  %v28_v2 = vld [vmem:[%s307_s1 + $0x10] sm:$0xff]  ;;  %21 = vst.msk [vmem:[#allocation2 + $0x8] sm:$0xff] %vm19_vm1, %v229_v5 }
   0x2   :  { %v185_v3 = vpack.c.bf16 %v27_v1, %v26_v0  ;;  %v29_v4 = vld [vmem:[%s307_s1 + $0x18] sm:$0xff]  ;;  %20 = vst.msk [vmem:[#allocation2] sm:$0xff] %vm19_vm1, %v229_v5  ;;  %v30_v7 = vld [vmem:[%s307_s1 + $0x20] sm:$0xff]  ;;  %v31_v8 = vld [vmem:[%s307_s1 + $0x28] sm:$0xff] }
   0x3   :  { %v189_v6 = vpack.c.bf16 %v29_v4, %v28_v2  ;;  %v24_v9 = vld [vmem:[%s306_s0] sm:$0xff] }
   0x4   :  { %186 = vmatprep.subr.bf16.mxu0 %v185_v3  ;;  %182 = vmatprep.mubr.msk.f32.mxu0 %vm34_vm0, %v24_v9 }
   0x5   :  { %8 = vsyncpa [#allocation4], 0  ;;  %188 = vmatpush3.bf16.msra.mxu0 %v185_v3  ;;  %v193_v10 = vpack.c.bf16 %v31_v8, %v30_v7  ;;  %v32_v11 = vld [vmem:[%s307_s1 + $0x30] sm:$0xff]  ;;  %v33_v12 = vld [vmem:[%s307_s1 + $0x38] sm:$0xff]  ;;  %s230_s6 = smov [#allocation3]  }
   0x6   :  { %190 = vmatprep.subr.bf16.mxu0 %v189_v6  ;;  %v197_v13 = vpack.c.bf16 %v33_v12, %v32_v11  ;;  %v25_v14 = vld [vmem:[%s306_s0 + $0x8] sm:$0xff]  ;;  %v155_v21 = vld [vmem:[%s308_s2] ss:$0 sm:$0xff]  ;;  %s142_s7 = sshll.u32 %s230_s6, 4  ;;  %s143_s7 = int_to_ptr.vmem [resolvable:$true] %s142_s7 }
   0x7   :  { %s205_s0 = scalar_lea.vmem %s143_s7, 256  ;;  %p210_p1 = scmp.lt.s32.totalorder %s143_s7, %s143_s7 }
   0x8   :  { %v23_v15 = vld [vmem:[#allocation2 + $0x8] sm:$0xff]  ;;  %p206_p0 = scmp.ne.s32.totalorder %s143_s7, %s205_s0  ;;  %p211_p2 = scmp.lt.s32.totalorder %s205_s0, %s205_s0 }
   0x9   :  { %192 = vmatpush3.bf16.msra.mxu0 %v189_v6  ;;  %v22_v16 = vld [vmem:[#allocation2] sm:$0xff] }
   0xa   :  { %194 = vmatprep.subr.bf16.mxu0 %v193_v10  ;;  %p212_p3 = por %p211_p2, %p210_p1 }
   0xc   :  { %p213_p4 = pnand %p212_p3, %p206_p0 }
   0xd   :  { %196 = vmatpush3.bf16.msra.mxu0 %v193_v10 }
   0xe   :  { %198 = vmatprep.subr.bf16.mxu0 %v197_v13 }
  0x11   :  { %200 = vmatpush3.bf16.msra.mxu0 %v197_v13 }
  0x14   :  { %183 = vmatmul.mubr.msk.f32.vlgmr.msra.gmra.mrb[0].mxu0 %vm34_vm0, %v25_v14 }
  0xe7   :  { %v184_v17 = vpop.f32.mrb[0].mxu0 }
  0xe8   :  { %v117_v18 = vadd.f32 %v184_v17, %v23_v15  ;;  %v107_v19 = vpop.f32.mrb[1].mxu0 }
  0xe9   :  { %v116_v20 = vadd.f32 %v107_v19, %v22_v16 }
  0xea   :  { %120 = vst.msk [vmem:[#allocation2 + $0x8] sm:$0xff] %vm19_vm1, %v117_v18 }
  0xeb   :  { %119 = vst.msk [vmem:[#allocation2] sm:$0xff] %vm19_vm1, %v116_v20 }
  0xf1   :  { %v125_v22 = vld [vmem:[#allocation2 + $0x8] sm:$0xff] }
  0xf2   :  { %v124_v23 = vld [vmem:[#allocation2] sm:$0xff]  ;;  %v134_v24 = vadd.f32 %v155_v21, %v125_v22 }
  0xf3   :  { %v133_v25 = vadd.f32 %v155_v21, %v124_v23 }
  0xf4   :  { %136 = vst.msk [vmem:[#allocation3 + $0x8] sm:$0xff] %vm19_vm1, %v134_v24 }
  0xf5   :  { %135 = vst.msk [vmem:[#allocation3] sm:$0xff] %vm19_vm1, %v133_v25 }
  0xf6   :  { %216 = shalt.err (!%p213_p4)
}
  0xf7   :  { %s217_s9 = scalar_lea.hbm %s309_s3, 256 }
  0xf8   :  { %p218_p5 = scmp.ne.s32.totalorder %s309_s3, %s217_s9  ;;  %p221_p6 = scmp.lt.u32.totalorder %s217_s9, %s309_s3 }
  0xfa   :  { %p223_p7 = pnand %p221_p6, %p218_p5 }
  0xfc   :  { %226 = shalt.err (!%p223_p7)
}
  0xfd   :  { %s231_s14 = smov 128   ;;  %s232_s15 = smov 8  }
  0xfe   :  { %148 = dma.vmem_to_hbm [thread:$0]  %s143_s7, 256, %s309_s3, [#allocation4], %s231_s14, %s231_s14, %s232_s15  }
  0xff   :  { %227 = dma.done.wait [#allocation4], 256  }
 0x100   :  { %228 = vsyncadd [#allocation4], 4294967040 }
 0x101   :  { %152 = vsyncpa [#allocation4], 1 }

// kernel: retention_forward.5
= control target key start
LH: loop header
LB: loop body
LE: loop exit
PB: predicated region body
PF: predicated region fallthrough
CT: control target
= control target key end

     0   :  { %s960_s18 = smov 0   ;;  %s962_s19 = smov 0   ;;  %s1044_s0 = inlined_call_operand.vmem [shape: f32[2,8,32], index: 0, kind: input, shape index: {}]   ;;  %s1045_s1 = inlined_call_operand.vmem [shape: f32[2,8,32], index: 1, kind: input, shape index: {}]   ;;  %s1046_s2 = inlined_call_operand.vmem [shape: f32[2,8,64], index: 2, kind: input, shape index: {}]   ;;  %s1047_s3 = inlined_call_operand.vmem [shape: f32[8,32], index: 3, kind: input, shape index: {}]   ;;  %s1048_s4 = inlined_call_operand.vmem [shape: f32[8,32], index: 4, kind: input, shape index: {}]   ;;  %s1049_s5 = inlined_call_operand.vmem [shape: f32[2,8,64], index: 5, kind: output, shape index: {}]  }
   0x1   :  { %s964_s20 = smov 0  }
   0x2 LB: > { %s27_s21 = sadd.s32 1, %s917_s19  ;;  %p815_p0 = scmp.ge.s32.totalorder %s921_s20, 1  ;;  %s921_s20 = sphi %s964_s20, %s15_s20   ;;  %s917_s19 = sphi %s962_s19, %s1051_s19   ;;  %s913_s18 = sphi %s960_s18, %s1050_s18  }
   0x3   : > { %p29_p1 = scmp.ge.s32.totalorder %s27_s21, 2  ;;  %p223_p2 = scmp.lt.s32.totalorder %s921_s20, 3 }
   0x5   : > { %s1053_s21 = smov (%p29_p1, %s27_s21), 0  ;;  %p224_p3 = pnand %p815_p0, %p223_p2 }
   0x6   : > { %p263_p4 = scmp.lt.s32.totalorder (!%p224_p3), %s913_s18, 1  ;;  %s923_s29 = smov (!%p224_p3), 32   ;;  %vm306_vm0 = vcmask (!%p224_p3), 1047808   ;;  %v291_v7 = vlaneseq (!%p224_p3)  ;;  %v924_v8 = vmov (!%p224_p3), 0.0   ;;  %vm925_vm1 = vmmov (!%p224_p3), 0   ;;  %v288_v27 = vld [vmem:[%s1047_s3] sm:$0xff] (!%p224_p3) }
   0x7   : > { %227 = sbr.rel (%p224_p3) target bundleno = 1463 (0x5b7), region = 40  ;;  %836 = vmatprep.subr.mxu0 (!%p224_p3), %v924_v8  ;;  %841 = vmatprep.subr.mxu1 (!%p224_p3), %v924_v8  ;;  %s926_s30 = smov (!%p224_p3), 97   ;;  %vm363_vm3 = vcmask (!%p224_p3), 64512   ;;  %v329_v29 = vld [vmem:[%s1048_s4] sm:$0xff] (!%p224_p3)  ;;  %vm368_vm5 = vcmask (!%p224_p3), 130048   ;;  %vm705_vm6 = vcmask (!%p224_p3), 261120  }
   0x8   : > { %v292_v9 = vand.u32 (!%p224_p3), 127, %v291_v7  ;;  %v351_v10 = vshrl.u32 (!%p224_p3), %v291_v7, 7  ;;  %838 = vmatprep.mubr.msk.f32.mxu0 (!%p224_p3), %vm925_vm1, %v924_v8  ;;  %843 = vmatprep.mubr.msk.f32.mxu1 (!%p224_p3), %vm925_vm1, %v924_v8  ;;  %s927_s6 = smov (!%p224_p3), 127   ;;  %s928_s11 = smov (!%p224_p3), 112   ;;  %vm707_vm7 = vcmask (!%p224_p3), 523264  }
   0x9   : > { %s929_s15 = smov (!%p224_p3), 96  }
   0xa   : > { %v354_v12 = vcvt.s32.f32 (!%p224_p3), %v351_v10  ;;  %v355_v13 = vcvt.s32.f32 (!%p224_p3), %v292_v9  ;;  %v297_v26 = vand.u32 (!%p224_p3), 1, %v292_v9 }
   0xc   : > { %v356_v17 = vsub.f32 (!%p224_p3), %v354_v12, %v355_v13  ;;  %vm305_vm4 = vcmp.eq.s32.totalorder (!%p224_p3), %v297_v26, 0 }
   0xe   : > { %s1055_s18 = smov (!%p263_p4, %s913_s18), 1  ;;  %v358_v20 = vmax.f32 %v356_v17, 0.0  ;;  %vm357_vm2 = vcmp.ge.f32.partialorder %v356_v17, 0.0 }
   0xf   : > { %s978_s22 = sshll.u32 %s1055_s18, 3 }
  0x10   : > { %s273_s25 = scalar_lea.vmem %s1045_s1, %s978_s22  ;;  %s269_s28 = scalar_lea.vmem %s1044_s0, %s978_s22  ;;  %v359_v21 = vmul.f32 -0.031748697, %v358_v20  ;;  %v528_v49 = vmul.f32 -0.015748357, %v358_v20 }
  0x11   : > { %v326_v0 = vld [vmem:[%s273_s25] sm:$0xff]  ;;  %s277_s14 = scalar_lea.vmem %s1046_s2, %s978_s22  ;;  %s284_s18 = scalar_lea.vmem %s1049_s5, %s978_s22 }
  0x12   : > { %v327_v1 = vmul.f32 0.17677669, %v326_v0  ;;  %v286_v2 = vld [vmem:[%s269_s28] sm:$0xff]  ;;  %v360_v22 = vmul.f32 1.442695, %v359_v21 }
  0x13   : > { %v323_v36 = vmul.f32 %v288_v27, %v286_v2  ;;  %v529_v50 = vmul.f32 1.442695, %v528_v49  ;;  %v349_v51 = vld [vmem:[%s277_s14] sm:$0xff] }
  0x14   : > { %330 = vrot.lane.b32.xlu0 %v327_v1, %s923_s29  ;;  %887 = vpow2.f32 %v360_v22  ;;  %v346_v31 = vmul.f32 %v327_v1, %v288_v27  ;;  %842 = vmatpush3.msra.mxu1 %v349_v51 }
  0x15   : > { %846 = vmatprep.subr.mxu1 %v924_v8 }
  0x18   : > { %307 = vrot.lane.b32.xlu0 %v286_v2, %s923_s29 }
  0x1e   : > { %v888_v23 = vpop.eup %887 }
  0x1f   : > { %v362_v24 = vsel %vm357_vm2, %v888_v23, 0.0 }
  0x20   : > { %v364_v25 = vsel %vm363_vm3, %v362_v24, 0.0 }
  0x86   : > { %v331_v3 = vpop.permute.xlu0 %330 }
  0x87   : > { %v332_v4 = vsel %vm306_vm0, %v331_v3, %v327_v1 }
  0x88   : > { %333 = vrot.lane.b32.xlu1 %v332_v4, %s923_s29 }
  0x8a   : > { %v308_v5 = vpop.permute.xlu0 %307 }
  0x8b   : > { %v309_v6 = vsel %vm306_vm0, %v308_v5, %v286_v2 }
  0x8c   : > { %310 = vrot.lane.b32.xlu1 %v309_v6, %s923_s29 }
  0xfa   : > { %v334_v11 = vpop.permute.xlu1 %333 }
  0xfb   : > { %v335_v14 = vsel %vm306_vm0, %v334_v11, %v327_v1 }
  0xfc   : > { %v336_v15 = vsub.f32 0.0, %v335_v14  ;;  %342 = vrot.lane.b32.xlu1 %v335_v14, %s926_s30 }
  0xfe   : > { %338 = vrot.lane.b32.xlu0 %v336_v15, %s927_s6  ;;  %v311_v16 = vpop.permute.xlu1 %310 }
  0xff   : > { %v312_v18 = vsel %vm306_vm0, %v311_v16, %v286_v2 }
 0x100   : > { %319 = vrot.lane.b32.xlu1 %v312_v18, %s926_s30  ;;  %v313_v19 = vsub.f32 0.0, %v312_v18 }
 0x102   : > { %315 = vrot.lane.b32.xlu0 %v313_v19, %s927_s6 }
 0x121   : > { %365 = vadd.xlane.f32.xlu0 %v364_v25 }
 0x16e   : > { %v343_v28 = vpop.permute.xlu1 %342 }
 0x170   : > { %v339_v30 = vpop.permute.xlu0 %338 }
 0x171   : > { %v345_v32 = vsel %vm305_vm4, %v339_v30, %v343_v28 }
 0x172   : > { %v347_v33 = vmul.f32 %v345_v32, %v329_v29  ;;  %v320_v34 = vpop.permute.xlu1 %319 }
 0x174   : > { %v316_v35 = vpop.permute.xlu0 %315  ;;  %v348_v37 = vadd.f32 %v347_v33, %v346_v31 }
 0x175   : > { %v322_v38 = vsel %vm305_vm4, %v316_v35, %v320_v34 }
 0x176   : > { %v324_v39 = vmul.f32 %v329_v29, %v322_v38  ;;  %538 = vrot.lane.b32.xlu0 %v348_v37, %s928_s11  ;;  %837 = vmatpush3.xpose.msk.msra.mxu0 %vm368_vm5, %v348_v37 }
 0x177   : > { %851 = vmatprep.subr.mxu0 %v924_v8 }
 0x178   : > { %v325_v40 = vadd.f32 %v324_v39, %v323_v36 }
 0x17a   : > { %839 = vmatmul.mubr.msk.f32.vlgmr.msra.gmra.mrb[0].mxu0 %vm368_vm5, %v325_v40 }
 0x17b   : > { %853 = vmatprep.mubr.msk.f32.mxu0 %vm925_vm1, %v924_v8 }
 0x1ae   : > { %v366_v41 = vpop.xlane.xlu0 %365 }
 0x1af   : > { %889 = vrsqrt.f32 %v366_v41 }
 0x1b0   : > { %891 = vpow2.f32 %v529_v50 }
 0x1b9   : > { %v890_v42 = vpop.eup %889 }
 0x1ba   : > { %v445_v43 = vmul.f32 %v890_v42, %v362_v24  ;;  %v892_v52 = vpop.eup %891 }
 0x1bb   : > { %v531_v53 = vsel %vm357_vm2, %v892_v52, 0.0 }
 0x1bc   : > { %v532_v54 = vsel %vm363_vm3, %v531_v53, 0.0 }
 0x1bd   : > { %533 = vadd.xlane.f32.xlu0 %v532_v54 }
 0x1d3   : > { %625 = vrot.lane.b32.xlu0 %v349_v51, %s929_s15 }
 0x1e8   : > { %v539_v60 = vpop.permute.xlu0 %538 }
 0x24a   : > { %v534_v62 = vpop.xlane.xlu0 %533 }
 0x24d   : > { %v441_v44 = vpop.f32.mrb[0].mxu0 }
 0x24e   : > { %v446_v45 = vmul.f32 %v445_v43, %v441_v44  ;;  %v840_v46 = vpop.f32.mrb[1].mxu0 }
 0x250   : > { %v447_v47 = vand.u32 2147483647, %v446_v45 }
 0x252   : > { %v448_v48 = vsel %vm363_vm3, %v447_v47, 0.0 }
 0x253   : > { %449 = vadd.xlane.f32.xlu1 %v448_v48 }
 0x264   : > { %536 = vrot.lane.b32.xlu1 %v325_v40, %s928_s11 }
 0x2e0   : > { %v450_v55 = vpop.xlane.xlu1 %449 }
 0x2e1   : > { %v451_v56 = vmax.f32 %v450_v55, 1.0 }
 0x2e3   : > { %v452_v57 = vmin.f32 %v451_v56, 50000.0 }
 0x2e4   : > { %v537_v61 = vpop.permute.xlu1 %536 }
 0x2e5   : > { %893 = vrcp.f32 %v452_v57 }
 0x2e6   : > { %895 = vrsqrt.f32 %v534_v62 }
 0x2ef   : > { %v894_v58 = vpop.eup %893 }
 0x2f0   : > { %v454_v59 = vmul.f32 %v894_v58, %v446_v45  ;;  %v896_v63 = vpop.eup %895 }
 0x2f1   : > { %v614_v2 = vmul.f32 %v896_v63, %v531_v53 }
 0x2f2   : > { %844 = vmatmul.mubr.msk.f32.vlgmr.msra.gmra.mrb[0].mxu1 %vm363_vm3, %v454_v59 }
 0x2f3   : > { %847 = vmatpush3.xpose.msk.msra.mxu1 %vm368_vm5, %v539_v60  ;;  %848 = vmatprep.mubr.msk.f32.mxu1 %vm925_vm1, %v924_v8  ;;  %v626_v8 = vpop.permute.xlu0 %625 }
 0x2f4   : > { %852 = vmatpush3.msra.mxu0 %v626_v8 }
 0x2f6   : > { %849 = vmatmul.mubr.msk.f32.vlgmr.msra.gmra.mrb[2].mxu1 %vm368_vm5, %v537_v61 }
 0x3c5   : > { %v524_v0 = vpop.f32.mrb[0].mxu1 }
 0x3c6   : > { %v845_v1 = vpop.f32.mrb[1].mxu1 }
 0x3c9   : > { %v610_v3 = vpop.f32.mrb[2].mxu1 }
 0x3ca   : > { %v615_v4 = vmul.f32 %v614_v2, %v610_v3  ;;  %v850_v5 = vpop.f32.mrb[3].mxu1 }
 0x3cc   : > { %v616_v6 = vand.u32 2147483647, %v615_v4 }
 0x3ce   : > { %v617_v7 = vsel %vm363_vm3, %v616_v6, 0.0 }
 0x3cf   : > { %618 = vadd.xlane.f32.xlu1 %v617_v7 }
 0x45c   : > { %v619_v9 = vpop.xlane.xlu1 %618 }
 0x45d   : > { %v620_v10 = vmax.f32 %v619_v9, 1.0 }
 0x45f   : > { %v621_v11 = vmin.f32 %v620_v10, 50000.0 }
 0x461   : > { %897 = vrcp.f32 %v621_v11 }
 0x46b   : > { %v898_v12 = vpop.eup %897 }
 0x46c   : > { %v623_v13 = vmul.f32 %v898_v12, %v615_v4 }
 0x46e   : > { %854 = vmatmul.mubr.msk.f32.vlgmr.msra.gmra.mrb[2].mxu0 %vm363_vm3, %v623_v13 }
 0x541   : > { %v697_v14 = vpop.f32.mrb[2].mxu0 }
 0x542   : > { %702 = vrot.lane.b32.xlu1 %v697_v14, %s923_s29  ;;  %v855_v15 = vpop.f32.mrb[3].mxu0 }
 0x5b4   : > { %v703_v16 = vpop.permute.xlu1 %702 }
 0x5b5   : > { %v706_v17 = vsel %vm705_vm6, %v524_v0, %v703_v16 }
 0x5b6   : > { %708 = vst.msk [vmem:[%s284_s18] sm:$0xff] %vm707_vm7, %v706_v17 }
 0x5b7 PF: > { %s15_s20 = sadd.s32 1, %s921_s20   ;;  %s1050_s18 = smov %s917_s19 }
 0x5b8   : > { %p12_p5 = scmp.ge.s32.totalorder %s15_s20, 4   ;;  %s1051_s19 = smov %s1053_s21 }
 0x5ba   :  { %14 = sbr.rel (!%p12_p5) target bundleno = 2 (0x2), region = 78 }

</bundles_post_ra>
